<compile_context>
chip_gen: v6e
topology: v6e:2x2x1
jax: 0.10.0
libtpu: 0.0.40
codegen_flags: <defaults>
</compile_context>

<pallas_src>
import functools

import jax
import jax.numpy as jnp
from jax.experimental import pallas as pl
from jax.experimental.pallas import tpu as pltpu


# ----------------------------------------------------------------------------- helpers

def _round_up(x, m):
    return ((x + m - 1) // m) * m


def _l2norm(x, eps=1e-12):
    # F.normalize(x, p=2, dim=-1) == x / max(||x||, eps) == x * rsqrt(max(||x||^2, eps^2))
    ss = jnp.sum(x * x, axis=-1, keepdims=True)
    return x * jax.lax.rsqrt(jnp.maximum(ss, eps * eps))


# ----------------------------------------------------------------------------- stage 1:
# fused embedding Linear + L2-norm + Wq/Wk projections (per token, both modalities)

def _embed_project_kernel(x_ref, w_ref, b_ref, wq_ref, wk_ref, e_ref, q_ref, k_ref):
    # x_ref: (M, D_pad)  rows = flattened (sample, token) with per-sample L padding
    # w_ref: (D_pad, E_pad)  pre-transposed embedding weight
    # b_ref: (1, E_pad)
    # wq_ref/wk_ref: (E_pad, E_pad)  pre-transposed mha.w_qs / mha.w_ks
    x = x_ref[...]
    emb = jnp.dot(x, w_ref[...], preferred_element_type=jnp.float32) + b_ref[...]
    emb_n = _l2norm(emb)                                         # visual_norm / textual_norm
    q = _l2norm(jnp.dot(emb_n, wq_ref[...], preferred_element_type=jnp.float32))
    k = _l2norm(jnp.dot(emb_n, wk_ref[...], preferred_element_type=jnp.float32))
    e_ref[...] = emb
    q_ref[...] = q
    k_ref[...] = k


def fused_embed_project(x, w, b, wq, wk):
    """x:(B,L,D), w:(E,D), b:(E,), wq/wk:(E,E) -> (embed, q, k) each (B, L_pad, E_pad)."""
    B, L, D = x.shape
    E = w.shape[0]
    L_pad = _round_up(L, 8)
    D_pad = _round_up(D, 128)
    E_pad = _round_up(E, 128)
    M = B * L_pad

    # host-side padding / pre-transposition (free relative to kernel work)
    x_p = jnp.zeros((B, L_pad, D_pad), jnp.float32).at[:, :L, :D].set(x).reshape(M, D_pad)
    w_t = jnp.zeros((D_pad, E_pad), jnp.float32).at[:D, :E].set(w.T)
    b_p = jnp.zeros((1, E_pad), jnp.float32).at[0, :E].set(b)
    wq_t = jnp.zeros((E_pad, E_pad), jnp.float32).at[:E, :E].set(wq.T)
    wk_t = jnp.zeros((E_pad, E_pad), jnp.float32).at[:E, :E].set(wk.T)

    out_shape = tuple(jax.ShapeDtypeStruct((M, E_pad), jnp.float32) for _ in range(3))
    emb, q, k = pl.pallas_call(
        _embed_project_kernel,
        out_shape=out_shape,
        grid=(1,),
        in_specs=[
            pl.BlockSpec((M, D_pad), lambda i: (0, 0)),
            pl.BlockSpec((D_pad, E_pad), lambda i: (0, 0)),
            pl.BlockSpec((1, E_pad), lambda i: (0, 0)),
            pl.BlockSpec((E_pad, E_pad), lambda i: (0, 0)),
            pl.BlockSpec((E_pad, E_pad), lambda i: (0, 0)),
        ],
        out_specs=tuple(pl.BlockSpec((M, E_pad), lambda i: (0, 0)) for _ in range(3)),
        compiler_params=pltpu.CompilerParams(dimension_semantics=("arbitrary",)),
    )(x_p, w_t, b_p, wq_t, wk_t)

    shape3 = (B, L_pad, E_pad)
    return emb.reshape(shape3), q.reshape(shape3), k.reshape(shape3)


# ----------------------------------------------------------------------------- stage 2:
# cross-attention similarity; one text per grid step, all images per step, lane-dense row out

def _cross_sim_kernel(te_ref, qt_ref, kt_ref, ve_ref, qv_ref, kv_ref, o_ref, *,
                      n_img, len_v, len_t, temperature):
    # te_ref/qt_ref/kt_ref: (1, L_t_pad, E_pad)   textual embed / l2norm(Wq proj) / l2norm(Wk proj)
    # ve_ref/qv_ref/kv_ref: (B_v, L_v_pad, E_pad) visual  embed / l2norm(Wq proj) / l2norm(Wk proj)
    # o_ref: (1, 1, lanes) similarity row for this text (lanes >= n_img, 128-padded)
    txt_v = te_ref[0]                       # values for the att_text direction
    q_txt = qt_ref[0]
    k_txt = kt_ref[0]
    L_t_pad = txt_v.shape[0]
    L_v_pad = ve_ref.shape[1]
    lanes = o_ref.shape[-1]

    key_mask_t = jax.lax.broadcasted_iota(jnp.int32, (1, L_t_pad), 1) < len_t
    key_mask_v = jax.lax.broadcasted_iota(jnp.int32, (1, L_v_pad), 1) < len_v
    row_mask_v = jax.lax.broadcasted_iota(jnp.int32, (L_v_pad, 1), 0) < len_v
    row_mask_t = jax.lax.broadcasted_iota(jnp.int32, (L_t_pad, 1), 0) < len_t
    lane_idx = jax.lax.broadcasted_iota(jnp.int32, (1, lanes), 1)

    def attend(q, k, v, kmask):
        # scaled_dot_product_attention with q/k already projected + L2-normalized
        s = jnp.einsum("qd,kd->qk", q, k, preferred_element_type=jnp.float32)
        s = jnp.maximum(s, 0.0) * temperature          # relu * temperature
        s = jnp.where(kmask, s, -1e30)                 # mask padded key positions
        s = s - jnp.max(s, axis=-1, keepdims=True)
        p = jnp.exp(s)
        p = p * pl.reciprocal(jnp.sum(p, axis=-1, keepdims=True), approx=True)
        return _l2norm(jnp.dot(p, v, preferred_element_type=jnp.float32))

    acc = jnp.zeros((1, lanes), jnp.float32)
    inv_cnt = 1.0 / float(len_v * len_t)
    for i in range(n_img):                              # static, unrolled image loop
        vis_v = ve_ref[i]
        q_vis = qv_ref[i]
        k_vis = kv_ref[i]
        # att_text[t,i]: q = visual_norm[i]@Wq, k = textual_norm[t]@Wk, v = textual_embed[t]
        att_text = attend(q_vis, k_txt, txt_v, key_mask_t)      # (L_v_pad, E_pad)
        # att_vis[i,t] : q = textual_norm[t]@Wq, k = visual_norm[i]@Wk, v = visual_embed[i]
        att_vis = attend(q_txt, k_vis, vis_v, key_mask_v)       # (L_t_pad, E_pad)
        # mean_{q,k}(att_text @ att_vis^T) == <sum_q att_text, sum_k att_vis> / (L_v*L_t)
        a_bar = jnp.sum(jnp.where(row_mask_v, att_text, 0.0), axis=0, keepdims=True)
        b_bar = jnp.sum(jnp.where(row_mask_t, att_vis, 0.0), axis=0, keepdims=True)
        sim_i = jnp.sum(a_bar * b_bar, axis=-1, keepdims=True) * inv_cnt    # (1, 1)
        acc = acc + jnp.where(lane_idx == i, sim_i, 0.0)
    o_ref[0] = acc


def cross_similarity(te3, qt3, kt3, ve3, qv3, kv3, *, len_t, len_v, temperature=20.0):
    """MHAHead.get_similarity -> (B_t, B_v), from the padded stage-1 outputs."""
    B_t, L_t_pad, E_pad = te3.shape
    B_v, L_v_pad, _ = ve3.shape
    lanes = _round_up(B_v, 128)

    kernel = functools.partial(_cross_sim_kernel, n_img=B_v, len_v=len_v,
                               len_t=len_t, temperature=temperature)
    txt_spec = pl.BlockSpec((1, L_t_pad, E_pad), lambda t: (t, 0, 0))
    vis_spec = pl.BlockSpec((B_v, L_v_pad, E_pad), lambda t: (0, 0, 0))  # resident across grid
    out = pl.pallas_call(
        kernel,
        out_shape=jax.ShapeDtypeStruct((B_t, 1, lanes), jnp.float32),
        grid=(B_t,),
        in_specs=[txt_spec, txt_spec, txt_spec, vis_spec, vis_spec, vis_spec],
        out_specs=pl.BlockSpec((1, 1, lanes), lambda t: (t, 0, 0)),
        compiler_params=pltpu.CompilerParams(dimension_semantics=("parallel",)),
    )(te3, qt3, kt3, ve3, qv3, kv3)
    return out[:, 0, :B_v]


# ----------------------------------------------------------------------------- MHAHead wrapper

def init_params(key, visual_size, textual_size, embed_size):
    """Deterministic init matching MHAHead._init_weight (kaiming_normal, fan_out; bias=0)."""
    k1, k2, k3, k4 = jax.random.split(key, 4)
    std = jnp.sqrt(2.0 / embed_size)  # gain sqrt(2), fan_out = out_features = embed_size
    return {
        "w_vis": jax.random.normal(k1, (embed_size, visual_size), jnp.float32) * std,
        "b_vis": jnp.zeros((embed_size,), jnp.float32),
        "w_txt": jax.random.normal(k2, (embed_size, textual_size), jnp.float32) * std,
        "b_txt": jnp.zeros((embed_size,), jnp.float32),
        "w_qs": jax.random.normal(k3, (embed_size, embed_size), jnp.float32) * std,
        "w_ks": jax.random.normal(k4, (embed_size, embed_size), jnp.float32) * std,
    }


def mha_head_forward(visual_feature, textual_feature, params, temperature=20.0):
    """MHAHead.forward (vit config, whole=False).

    Returns ((visual_embed, textual_embed), similarity) where `similarity` is the
    (num_text, num_img) matrix computed by get_similarity during training.
    """
    B_v, L_v, _ = visual_feature.shape
    B_t, L_t, _ = textual_feature.shape
    E = params["w_vis"].shape[0]

    ve3, qv3, kv3 = fused_embed_project(
        visual_feature, params["w_vis"], params["b_vis"], params["w_qs"], params["w_ks"])
    te3, qt3, kt3 = fused_embed_project(
        textual_feature, params["w_txt"], params["b_txt"], params["w_qs"], params["w_ks"])

    similarity = cross_similarity(te3, qt3, kt3, ve3, qv3, kv3,
                                  len_t=L_t, len_v=L_v, temperature=temperature)
    visual_embed = ve3[:, :L_v, :E]
    textual_embed = te3[:, :L_t, :E]
    return (visual_embed, textual_embed), similarity


# ----------------------------------------------------------------------------- pure-JAX reference

def _ref_forward(visual_feature, textual_feature, params, temperature=20.0):
    ve = visual_feature @ params["w_vis"].T + params["b_vis"]
    te = textual_feature @ params["w_txt"].T + params["b_txt"]
    vn, tn = _l2norm(ve), _l2norm(te)

    def mha(q, k, v):  # q:(Bq,Lq,E)  k,v:(Bk,Lk,E)  -> (Bk,Bq,Lq,E)
        qp = _l2norm(q @ params["w_qs"].T)
        kp = _l2norm(k @ params["w_ks"].T)
        attn = jnp.einsum("ild,jkd->ijlk", qp, kp)
        attn = jax.nn.softmax(jnp.maximum(attn, 0.0) * temperature, axis=-1)
        out = jnp.einsum("ijlk,jkd->ijld", attn, v)
        return jnp.transpose(out, (1, 0, 2, 3))

    att_text = _l2norm(mha(vn, tn, te))                       # (B_t, B_v, L_v, E)
    att_vis = _l2norm(mha(tn, vn, ve))                        # (B_v, B_t, L_t, E)
    prod = jnp.einsum("tvqe,tvke->tvqk", att_text, jnp.transpose(att_vis, (1, 0, 2, 3)))
    return ve, te, prod.mean(axis=(2, 3))


# ----------------------------------------------------------------------------- main

if __name__ == "__main__":
    B, L_v, L_t = 2, 8, 6
    visual_size, textual_size, embed_size = 48, 64, 32

    key = jax.random.PRNGKey(0)
    kp, kv, kt = jax.random.split(key, 3)
    params = init_params(kp, visual_size, textual_size, embed_size)
    visual_feature = jax.random.normal(kv, (B, L_v, visual_size), jnp.float32)
    textual_feature = jax.random.normal(kt, (B, L_t, textual_size), jnp.float32)

    (vis_embed, txt_embed), sim = mha_head_forward(visual_feature, textual_feature, params)
    jax.block_until_ready((vis_embed, txt_embed, sim))

    ve_ref, te_ref, sim_ref = _ref_forward(visual_feature, textual_feature, params)
    assert jnp.allclose(vis_embed, ve_ref, rtol=1e-2, atol=1e-2)
    assert jnp.allclose(txt_embed, te_ref, rtol=1e-2, atol=1e-2)
    assert jnp.allclose(sim, sim_ref, rtol=1e-2, atol=1e-2)

    print("KERNEL_OK")
</pallas_src>

<mosaic_0001>
module attributes {stable_mosaic.version = 11 : i64} {
  func.func @_embed_project_kernel(%arg0: i32, %arg1: memref<16x128xf32, #tpu.memory_space<vmem>>, %arg2: memref<128x128xf32, #tpu.memory_space<vmem>>, %arg3: memref<1x128xf32, #tpu.memory_space<vmem>>, %arg4: memref<128x128xf32, #tpu.memory_space<vmem>>, %arg5: memref<128x128xf32, #tpu.memory_space<vmem>>, %arg6: memref<16x128xf32, #tpu.memory_space<vmem>>, %arg7: memref<16x128xf32, #tpu.memory_space<vmem>>, %arg8: memref<16x128xf32, #tpu.memory_space<vmem>>) attributes {dimension_semantics = [#tpu.dimension_semantics<arbitrary>], iteration_bounds = array<i64: 1>, scalar_prefetch = 0 : i64, scratch_operands = 0 : i64, tpu.core_type = #tpu.core_type<tc>, window_params = [{pipeline_mode = #tpu.pipeline_mode<synchronous>, transform_indices = @transform_0, window_bounds = array<i64: 16, 128>}, {pipeline_mode = #tpu.pipeline_mode<synchronous>, transform_indices = @transform_1, window_bounds = array<i64: 128, 128>}, {pipeline_mode = #tpu.pipeline_mode<synchronous>, transform_indices = @transform_2, window_bounds = array<i64: 1, 128>}, {pipeline_mode = #tpu.pipeline_mode<synchronous>, transform_indices = @transform_3, window_bounds = array<i64: 128, 128>}, {pipeline_mode = #tpu.pipeline_mode<synchronous>, transform_indices = @transform_4, window_bounds = array<i64: 128, 128>}, {pipeline_mode = #tpu.pipeline_mode<synchronous>, transform_indices = @transform_5, window_bounds = array<i64: 16, 128>}, {pipeline_mode = #tpu.pipeline_mode<synchronous>, transform_indices = @transform_6, window_bounds = array<i64: 16, 128>}, {pipeline_mode = #tpu.pipeline_mode<synchronous>, transform_indices = @transform_7, window_bounds = array<i64: 16, 128>}]} {
    %c0 = arith.constant 0 : index
    %c0_0 = arith.constant 0 : index
    %0 = vector.load %arg1[%c0, %c0_0] : memref<16x128xf32, #tpu.memory_space<vmem>>, vector<16x128xf32>
    %c0_1 = arith.constant 0 : index
    %c0_2 = arith.constant 0 : index
    %1 = vector.load %arg2[%c0_1, %c0_2] : memref<128x128xf32, #tpu.memory_space<vmem>>, vector<128x128xf32>
    %cst = arith.constant dense<0.000000e+00> : vector<16x128xf32>
    %2 = tpu.matmul %0, %1, %cst {dimension_numbers = #tpu.dot_dimension_numbers<[1], [0], [0], [1], [0, 0, 1, 1], [], []>} : vector<16x128xf32>, vector<128x128xf32>, vector<16x128xf32> -> vector<16x128xf32>
    %c0_3 = arith.constant 0 : index
    %c0_4 = arith.constant 0 : index
    %3 = vector.load %arg3[%c0_3, %c0_4] : memref<1x128xf32, #tpu.memory_space<vmem>>, vector<1x128xf32>
    %4 = vector.broadcast %3 : vector<1x128xf32> to vector<16x128xf32>
    %5 = arith.addf %2, %4 : vector<16x128xf32>
    %6 = arith.mulf %5, %5 : vector<16x128xf32>
    %cst_5 = arith.constant dense<0.000000e+00> : vector<16xf32>
    %7 = vector.multi_reduction <add>, %6, %cst_5 [1] : vector<16x128xf32> to vector<16xf32>
    %8 = vector.shape_cast %7 : vector<16xf32> to vector<16x1xf32>
    %cst_6 = arith.constant 1.000000e-24 : f32
    %9 = vector.broadcast %cst_6 : f32 to vector<16x1xf32>
    %10 = arith.maximumf %8, %9 : vector<16x1xf32>
    %11 = math.rsqrt %10 : vector<16x1xf32>
    %12 = vector.broadcast %11 : vector<16x1xf32> to vector<16x128xf32>
    %13 = arith.mulf %5, %12 : vector<16x128xf32>
    %c0_7 = arith.constant 0 : index
    %c0_8 = arith.constant 0 : index
    %14 = vector.load %arg4[%c0_7, %c0_8] : memref<128x128xf32, #tpu.memory_space<vmem>>, vector<128x128xf32>
    %cst_9 = arith.constant dense<0.000000e+00> : vector<16x128xf32>
    %15 = tpu.matmul %13, %14, %cst_9 {dimension_numbers = #tpu.dot_dimension_numbers<[1], [0], [0], [1], [0, 0, 1, 1], [], []>} : vector<16x128xf32>, vector<128x128xf32>, vector<16x128xf32> -> vector<16x128xf32>
    %16 = arith.mulf %15, %15 : vector<16x128xf32>
    %cst_10 = arith.constant dense<0.000000e+00> : vector<16xf32>
    %17 = vector.multi_reduction <add>, %16, %cst_10 [1] : vector<16x128xf32> to vector<16xf32>
    %18 = vector.shape_cast %17 : vector<16xf32> to vector<16x1xf32>
    %cst_11 = arith.constant 1.000000e-24 : f32
    %19 = vector.broadcast %cst_11 : f32 to vector<16x1xf32>
    %20 = arith.maximumf %18, %19 : vector<16x1xf32>
    %21 = math.rsqrt %20 : vector<16x1xf32>
    %22 = vector.broadcast %21 : vector<16x1xf32> to vector<16x128xf32>
    %23 = arith.mulf %15, %22 : vector<16x128xf32>
    %c0_12 = arith.constant 0 : index
    %c0_13 = arith.constant 0 : index
    %24 = vector.load %arg5[%c0_12, %c0_13] : memref<128x128xf32, #tpu.memory_space<vmem>>, vector<128x128xf32>
    %cst_14 = arith.constant dense<0.000000e+00> : vector<16x128xf32>
    %25 = tpu.matmul %13, %24, %cst_14 {dimension_numbers = #tpu.dot_dimension_numbers<[1], [0], [0], [1], [0, 0, 1, 1], [], []>} : vector<16x128xf32>, vector<128x128xf32>, vector<16x128xf32> -> vector<16x128xf32>
    %26 = arith.mulf %25, %25 : vector<16x128xf32>
    %cst_15 = arith.constant dense<0.000000e+00> : vector<16xf32>
    %27 = vector.multi_reduction <add>, %26, %cst_15 [1] : vector<16x128xf32> to vector<16xf32>
    %28 = vector.shape_cast %27 : vector<16xf32> to vector<16x1xf32>
    %cst_16 = arith.constant 1.000000e-24 : f32
    %29 = vector.broadcast %cst_16 : f32 to vector<16x1xf32>
    %30 = arith.maximumf %28, %29 : vector<16x1xf32>
    %31 = math.rsqrt %30 : vector<16x1xf32>
    %32 = vector.broadcast %31 : vector<16x1xf32> to vector<16x128xf32>
    %33 = arith.mulf %25, %32 : vector<16x128xf32>
    %c0_17 = arith.constant 0 : index
    %c0_18 = arith.constant 0 : index
    %34 = vector.load %arg6[%c0_17, %c0_18] : memref<16x128xf32, #tpu.memory_space<vmem>>, vector<16x128xf32>
    tpu.vector_store %arg6[%c0_17, %c0_18], %5 {strides = array<i32>} : memref<16x128xf32, #tpu.memory_space<vmem>>, vector<16x128xf32>,
    %c0_19 = arith.constant 0 : index
    %c0_20 = arith.constant 0 : index
    %35 = vector.load %arg7[%c0_19, %c0_20] : memref<16x128xf32, #tpu.memory_space<vmem>>, vector<16x128xf32>
    tpu.vector_store %arg7[%c0_19, %c0_20], %23 {strides = array<i32>} : memref<16x128xf32, #tpu.memory_space<vmem>>, vector<16x128xf32>,
    %c0_21 = arith.constant 0 : index
    %c0_22 = arith.constant 0 : index
    %36 = vector.load %arg8[%c0_21, %c0_22] : memref<16x128xf32, #tpu.memory_space<vmem>>, vector<16x128xf32>
    tpu.vector_store %arg8[%c0_21, %c0_22], %33 {strides = array<i32>} : memref<16x128xf32, #tpu.memory_space<vmem>>, vector<16x128xf32>,
    return
  }
  func.func @transform_0(%arg0: i32) -> (i32, i32) {
    %c0_i32 = arith.constant 0 : i32
    %c0_i32_0 = arith.constant 0 : i32
    %c0_i32_1 = arith.constant 0 : i32
    return %c0_i32, %c0_i32_0 : i32, i32
  }
  func.func @transform_1(%arg0: i32) -> (i32, i32) {
    %c0_i32 = arith.constant 0 : i32
    %c0_i32_0 = arith.constant 0 : i32
    %c0_i32_1 = arith.constant 0 : i32
    return %c0_i32, %c0_i32_0 : i32, i32
  }
  func.func @transform_2(%arg0: i32) -> (i32, i32) {
    %c0_i32 = arith.constant 0 : i32
    %c0_i32_0 = arith.constant 0 : i32
    %c0_i32_1 = arith.constant 0 : i32
    return %c0_i32, %c0_i32_0 : i32, i32
  }
  func.func @transform_3(%arg0: i32) -> (i32, i32) {
    %c0_i32 = arith.constant 0 : i32
    %c0_i32_0 = arith.constant 0 : i32
    %c0_i32_1 = arith.constant 0 : i32
    return %c0_i32, %c0_i32_0 : i32, i32
  }
  func.func @transform_4(%arg0: i32) -> (i32, i32) {
    %c0_i32 = arith.constant 0 : i32
    %c0_i32_0 = arith.constant 0 : i32
    %c0_i32_1 = arith.constant 0 : i32
    return %c0_i32, %c0_i32_0 : i32, i32
  }
  func.func @transform_5(%arg0: i32) -> (i32, i32) {
    %c0_i32 = arith.constant 0 : i32
    %c0_i32_0 = arith.constant 0 : i32
    %c0_i32_1 = arith.constant 0 : i32
    return %c0_i32, %c0_i32_0 : i32, i32
  }
  func.func @transform_6(%arg0: i32) -> (i32, i32) {
    %c0_i32 = arith.constant 0 : i32
    %c0_i32_0 = arith.constant 0 : i32
    %c0_i32_1 = arith.constant 0 : i32
    return %c0_i32, %c0_i32_0 : i32, i32
  }
  func.func @transform_7(%arg0: i32) -> (i32, i32) {
    %c0_i32 = arith.constant 0 : i32
    %c0_i32_0 = arith.constant 0 : i32
    %c0_i32_1 = arith.constant 0 : i32
    return %c0_i32, %c0_i32_0 : i32, i32
  }
}

</mosaic_0001>

<bundles_post_ra>
// kernel: tpu_custom_call.1
= control target key start
LH: loop header
LB: loop body
LE: loop exit
PB: predicated region body
PF: predicated region fallthrough
CT: control target
= control target key end

     0   :  { %13 = vsyncpa [#allocation3], 0  ;;  %s891_s0 = inlined_call_operand.hbm [shape: f32[16,128], index: 0, kind: input, shape index: {}]   ;;  %s892_s1 = inlined_call_operand.hbm [shape: f32[128,128], index: 1, kind: input, shape index: {}]   ;;  %s893_s2 = inlined_call_operand.vmem [shape: f32[1,128], index: 2, kind: input, shape index: {}]   ;;  %s894_s3 = inlined_call_operand.hbm [shape: f32[128,128], index: 3, kind: input, shape index: {}]   ;;  %s895_s4 = inlined_call_operand.hbm [shape: f32[128,128], index: 4, kind: input, shape index: {}]   ;;  %s896_s5 = inlined_call_operand.hbm [shape: f32[16,128], index: 5, kind: output, shape index: {0}]   ;;  %s897_s6 = inlined_call_operand.hbm [shape: f32[16,128], index: 6, kind: output, shape index: {1}]   ;;  %s898_s7 = inlined_call_operand.hbm [shape: f32[16,128], index: 7, kind: output, shape index: {2}]  }
   0x1   :  { %14 = vsyncpa [#allocation6], 0 }
   0x2   :  { %15 = vsyncpa [#allocation9], 0 }
   0x3   :  { %16 = vsyncpa [#allocation4], 0 }
   0x4   :  { %17 = vsyncpa [#allocation12], 0  ;;  %s785_s24 = smov [#allocation5]   ;;  %s786_s26 = smov [#allocation2]  }
   0x5   :  { %s35_s25 = sshll.u32 %s785_s24, 4  ;;  %s23_s27 = sshll.u32 %s786_s26, 4  ;;  %s36_s25 = int_to_ptr.vmem [resolvable:$true] %s35_s25  ;;  %s24_s27 = int_to_ptr.vmem [resolvable:$true] %s23_s27 }
   0x6   :  { %s643_s28 = scalar_lea.vmem %s36_s25, 2048  ;;  %p648_p1 = scmp.lt.s32.totalorder %s36_s25, %s36_s25 }
   0x7   :  { %p644_p0 = scmp.ne.s32.totalorder %s36_s25, %s643_s28  ;;  %p649_p2 = scmp.lt.s32.totalorder %s643_s28, %s643_s28 }
   0x9   :  { %p650_p3 = por %p649_p2, %p648_p1 }
   0xb   :  { %p651_p4 = pnand %p650_p3, %p644_p0 }
   0xd   :  { %654 = shalt.err (!%p651_p4)
}
   0xe   :  { %s787_s29 = smov 128   ;;  %s788_s30 = smov 8  }
   0xf   :  { %41 = dma.hbm_to_vmem [thread:$0]  %s892_s1, 2048, %s36_s25, [#allocation6], %s787_s29, %s787_s29, %s788_s30  }
  0x10   :  { %s663_s10 = scalar_lea.vmem %s24_s27, 256  ;;  %p668_p6 = scmp.lt.s32.totalorder %s24_s27, %s24_s27 }
  0x11   :  { %p664_p5 = scmp.ne.s32.totalorder %s24_s27, %s663_s10  ;;  %p669_p7 = scmp.lt.s32.totalorder %s663_s10, %s663_s10 }
  0x13   :  { %p670_p8 = por %p669_p7, %p668_p6 }
  0x15   :  { %p671_p9 = pnand %p670_p8, %p664_p5 }
  0x17   :  { %674 = shalt.err (!%p671_p9)
}
  0x18   :  { %29 = dma.hbm_to_vmem [thread:$0]  %s891_s0, 256, %s24_s27, [#allocation3], %s787_s29, %s787_s29, %s788_s30  }
  0x19   :  { %s789_s13 = smov [#allocation7]   ;;  %s790_s15 = smov [#allocation8]  }
  0x1a   :  { %s49_s14 = sshll.u32 %s789_s13, 4  ;;  %s61_s16 = sshll.u32 %s790_s15, 4  ;;  %s50_s14 = int_to_ptr.vmem [resolvable:$true] %s49_s14  ;;  %s62_s16 = int_to_ptr.vmem [resolvable:$true] %s61_s16 }
  0x1b   :  { %s683_s1 = scalar_lea.vmem %s50_s14, 2048  ;;  %p688_p11 = scmp.lt.s32.totalorder %s50_s14, %s50_s14 }
  0x1c   :  { %p684_p10 = scmp.ne.s32.totalorder %s50_s14, %s683_s1  ;;  %p689_p12 = scmp.lt.s32.totalorder %s683_s1, %s683_s1 }
  0x1e   :  { %p690_p13 = por %p689_p12, %p688_p11 }
  0x20   :  { %p691_p0 = pnand %p690_p13, %p684_p10 }
  0x22   :  { %694 = shalt.err (!%p691_p0)
}
  0x23   :  { %55 = dma.hbm_to_vmem [thread:$0]  %s894_s3, 2048, %s50_s14, [#allocation6], %s787_s29, %s787_s29, %s788_s30  }
  0x24   :  { %s703_s0 = scalar_lea.vmem %s62_s16, 2048  ;;  %p708_p2 = scmp.lt.s32.totalorder %s62_s16, %s62_s16 }
  0x25   :  { %p704_p1 = scmp.ne.s32.totalorder %s62_s16, %s703_s0  ;;  %p709_p3 = scmp.lt.s32.totalorder %s703_s0, %s703_s0 }
  0x27   :  { %p710_p4 = por %p709_p3, %p708_p2 }
  0x29   :  { %p711_p5 = pnand %p710_p4, %p704_p1 }
  0x2b   :  { %714 = shalt.err (!%p711_p5)
}
  0x2c   :  { %67 = dma.hbm_to_vmem [thread:$0]  %s895_s4, 2048, %s62_s16, [#allocation9], %s787_s29, %s787_s29, %s788_s30  }
  0x2d   :  { %775 = dma.done.wait [#allocation3], 256  }
  0x2e   :  { %776 = vsyncadd [#allocation3], 4294967040 }
  0x2f   :  { %777 = dma.done.wait [#allocation6], 4096  }
  0x30   :  { %778 = vsyncadd [#allocation6], 4294963200 }
  0x31   :  { %779 = dma.done.wait [#allocation9], 2048  }
  0x32   :  { %780 = vsyncadd [#allocation9], 4294965248  ;;  %v97_v0 = vld [vmem:[#allocation5 + $0x78] sm:$0xff]  ;;  %v96_v1 = vld [vmem:[#allocation5 + $0x70] sm:$0xff] }
  0x33   :  { %509 = vmatprep.subr.mxu0 %v97_v0  ;;  %v95_v2 = vld [vmem:[#allocation5 + $0x68] sm:$0xff]  ;;  %v94_v3 = vld [vmem:[#allocation5 + $0x60] sm:$0xff]  ;;  %v80_v4 = vld [vmem:[#allocation2] sm:$0xff] }
  0x34   :  { %510 = vmatpush3.msra.mxu0 %v97_v0  ;;  %v93_v5 = vld [vmem:[#allocation5 + $0x58] sm:$0xff]  ;;  %541 = vmatprep.mubr.f32.mxu0 %v80_v4  ;;  %v92_v6 = vld [vmem:[#allocation5 + $0x50] sm:$0xff]  ;;  %v91_v7 = vld [vmem:[#allocation5 + $0x48] sm:$0xff] }
  0x35   :  { %511 = vmatprep.subr.mxu0 %v96_v1  ;;  %v90_v8 = vld [vmem:[#allocation5 + $0x40] sm:$0xff]  ;;  %v89_v9 = vld [vmem:[#allocation5 + $0x38] sm:$0xff]  ;;  %v88_v10 = vld [vmem:[#allocation5 + $0x30] sm:$0xff] }
  0x36   :  { %512 = vmatpush3.msra.mxu0 %v96_v1  ;;  %v87_v11 = vld [vmem:[#allocation5 + $0x28] sm:$0xff]  ;;  %v86_v12 = vld [vmem:[#allocation5 + $0x20] sm:$0xff]  ;;  %v85_v13 = vld [vmem:[#allocation5 + $0x18] sm:$0xff] }
  0x37   :  { %513 = vmatprep.subr.mxu0 %v95_v2  ;;  %v84_v14 = vld [vmem:[#allocation5 + $0x10] sm:$0xff]  ;;  %v83_v15 = vld [vmem:[#allocation5 + $0x8] sm:$0xff]  ;;  %v82_v16 = vld [vmem:[#allocation5] sm:$0xff] }
  0x38   :  { %514 = vmatpush3.msra.mxu0 %v95_v2  ;;  %v81_v17 = vld [vmem:[#allocation2 + $0x8] sm:$0xff]  ;;  %v206_v20 = vld [vmem:[#allocation7 + $0x70] sm:$0xff]  ;;  %v205_v22 = vld [vmem:[#allocation7 + $0x68] sm:$0xff] }
  0x39   :  { %515 = vmatprep.subr.mxu0 %v94_v3  ;;  %v207_v18 = vld [vmem:[#allocation7 + $0x78] sm:$0xff]  ;;  %v309_v21 = vld [vmem:[#allocation8 + $0x70] sm:$0xff]  ;;  %v308_v23 = vld [vmem:[#allocation8 + $0x68] sm:$0xff] }
  0x3a   :  { %516 = vmatpush3.msra.mxu0 %v94_v3  ;;  %v310_v19 = vld [vmem:[#allocation8 + $0x78] sm:$0xff]  ;;  %544 = vmatprep.subr.mxu1 %v207_v18  ;;  %v204_v24 = vld [vmem:[#allocation7 + $0x60] sm:$0xff]  ;;  %v454_v28 = vld [vmem:[%s893_s2] ss:$0 sm:$0xff]  ;;  %s791_s2 = smov [#allocation10]  }
  0x3b   :  { %517 = vmatprep.subr.mxu0 %v93_v5  ;;  %545 = vmatpush3.msra.mxu1 %v207_v18  ;;  %v307_v25 = vld [vmem:[#allocation8 + $0x60] sm:$0xff]  ;;  %v203_v26 = vld [vmem:[#allocation7 + $0x58] sm:$0xff]  ;;  %v202_v35 = vld [vmem:[#allocation7 + $0x50] sm:$0xff]  ;;  %s409_s21 = sshll.u32 %s791_s2, 4  ;;  %s410_s21 = int_to_ptr.vmem [resolvable:$true] %s409_s21 }
  0x3c   :  { %518 = vmatpush3.msra.mxu0 %v93_v5  ;;  %546 = vmatprep.subr.mxu1 %v206_v20  ;;  %v306_v27 = vld [vmem:[#allocation8 + $0x58] sm:$0xff]  ;;  %v305_v36 = vld [vmem:[#allocation8 + $0x50] sm:$0xff]  ;;  %v201_v37 = vld [vmem:[#allocation7 + $0x48] sm:$0xff]  ;;  %s715_s22 = scalar_lea.vmem %s410_s21, 256  ;;  %p720_p7 = scmp.lt.s32.totalorder %s410_s21, %s410_s21 }
  0x3d   :  { %519 = vmatprep.subr.mxu0 %v92_v6  ;;  %547 = vmatpush3.msra.mxu1 %v206_v20  ;;  %v304_v38 = vld [vmem:[#allocation8 + $0x48] sm:$0xff]  ;;  %v200_v39 = vld [vmem:[#allocation7 + $0x40] sm:$0xff]  ;;  %v199_v41 = vld [vmem:[#allocation7 + $0x38] sm:$0xff]  ;;  %p716_p6 = scmp.ne.s32.totalorder %s410_s21, %s715_s22  ;;  %p721_p8 = scmp.lt.s32.totalorder %s715_s22, %s715_s22 }
  0x3e   :  { %520 = vmatpush3.msra.mxu0 %v92_v6  ;;  %548 = vmatprep.subr.mxu1 %v205_v22  ;;  %v303_v40 = vld [vmem:[#allocation8 + $0x40] sm:$0xff]  ;;  %v302_v42 = vld [vmem:[#allocation8 + $0x38] sm:$0xff]  ;;  %v198_v43 = vld [vmem:[#allocation7 + $0x30] sm:$0xff] }
  0x3f   :  { %521 = vmatprep.subr.mxu0 %v91_v7  ;;  %549 = vmatpush3.msra.mxu1 %v205_v22  ;;  %v301_v44 = vld [vmem:[#allocation8 + $0x30] sm:$0xff]  ;;  %v197_v45 = vld [vmem:[#allocation7 + $0x28] sm:$0xff]  ;;  %v196_v47 = vld [vmem:[#allocation7 + $0x20] sm:$0xff]  ;;  %p722_p9 = por %p721_p8, %p720_p7 }
  0x40   :  { %522 = vmatpush3.msra.mxu0 %v91_v7  ;;  %550 = vmatprep.subr.mxu1 %v204_v24  ;;  %v300_v46 = vld [vmem:[#allocation8 + $0x28] sm:$0xff]  ;;  %v299_v48 = vld [vmem:[#allocation8 + $0x20] sm:$0xff]  ;;  %v195_v49 = vld [vmem:[#allocation7 + $0x18] sm:$0xff] }
  0x41   :  { %523 = vmatprep.subr.mxu0 %v90_v8  ;;  %551 = vmatpush3.msra.mxu1 %v204_v24  ;;  %v298_v50 = vld [vmem:[#allocation8 + $0x18] sm:$0xff]  ;;  %v194_v51 = vld [vmem:[#allocation7 + $0x10] sm:$0xff]  ;;  %v193_v53 = vld [vmem:[#allocation7 + $0x8] sm:$0xff]  ;;  %p723_p10 = pnand %p722_p9, %p716_p6 }
  0x42   :  { %524 = vmatpush3.msra.mxu0 %v90_v8  ;;  %552 = vmatprep.subr.mxu1 %v203_v26  ;;  %v297_v52 = vld [vmem:[#allocation8 + $0x10] sm:$0xff]  ;;  %v296_v54 = vld [vmem:[#allocation8 + $0x8] sm:$0xff]  ;;  %v192_v55 = vld [vmem:[#allocation7] sm:$0xff] }
  0x43   :  { %525 = vmatprep.subr.mxu0 %v89_v9  ;;  %553 = vmatpush3.msra.mxu1 %v203_v26  ;;  %v295_v56 = vld [vmem:[#allocation8] sm:$0xff] }
  0x44   :  { %526 = vmatpush3.msra.mxu0 %v89_v9  ;;  %554 = vmatprep.subr.mxu1 %v202_v35 }
  0x45   :  { %527 = vmatprep.subr.mxu0 %v88_v10  ;;  %555 = vmatpush3.msra.mxu1 %v202_v35 }
  0x46   :  { %528 = vmatpush3.msra.mxu0 %v88_v10  ;;  %556 = vmatprep.subr.mxu1 %v201_v37 }
  0x47   :  { %529 = vmatprep.subr.mxu0 %v87_v11  ;;  %557 = vmatpush3.msra.mxu1 %v201_v37 }
  0x48   :  { %530 = vmatpush3.msra.mxu0 %v87_v11  ;;  %558 = vmatprep.subr.mxu1 %v200_v39 }
  0x49   :  { %531 = vmatprep.subr.mxu0 %v86_v12  ;;  %559 = vmatpush3.msra.mxu1 %v200_v39 }
  0x4a   :  { %532 = vmatpush3.msra.mxu0 %v86_v12  ;;  %560 = vmatprep.subr.mxu1 %v199_v41 }
  0x4b   :  { %533 = vmatprep.subr.mxu0 %v85_v13  ;;  %561 = vmatpush3.msra.mxu1 %v199_v41 }
  0x4c   :  { %534 = vmatpush3.msra.mxu0 %v85_v13  ;;  %562 = vmatprep.subr.mxu1 %v198_v43 }
  0x4d   :  { %535 = vmatprep.subr.mxu0 %v84_v14  ;;  %563 = vmatpush3.msra.mxu1 %v198_v43 }
  0x4e   :  { %536 = vmatpush3.msra.mxu0 %v84_v14  ;;  %564 = vmatprep.subr.mxu1 %v197_v45 }
  0x4f   :  { %537 = vmatprep.subr.mxu0 %v83_v15  ;;  %565 = vmatpush3.msra.mxu1 %v197_v45 }
  0x50   :  { %538 = vmatpush3.msra.mxu0 %v83_v15  ;;  %566 = vmatprep.subr.mxu1 %v196_v47 }
  0x51   :  { %539 = vmatprep.subr.mxu0 %v82_v16  ;;  %567 = vmatpush3.msra.mxu1 %v196_v47 }
  0x52   :  { %540 = vmatpush3.msra.mxu0 %v82_v16  ;;  %568 = vmatprep.subr.mxu1 %v195_v49 }
  0x53   :  { %542 = vmatmul.mubr.f32.vlgmr.msra.gmra.mxu0 %v81_v17  ;;  %579 = vmatprep.subr.mxu0 %v310_v19 }
  0x54   :  { %580 = vmatpush3.msra.mxu0 %v310_v19  ;;  %569 = vmatpush3.msra.mxu1 %v195_v49 }
  0x55   :  { %581 = vmatprep.subr.mxu0 %v309_v21  ;;  %570 = vmatprep.subr.mxu1 %v194_v51 }
  0x56   :  { %582 = vmatpush3.msra.mxu0 %v309_v21  ;;  %571 = vmatpush3.msra.mxu1 %v194_v51 }
  0x57   :  { %583 = vmatprep.subr.mxu0 %v308_v23  ;;  %572 = vmatprep.subr.mxu1 %v193_v53 }
  0x58   :  { %584 = vmatpush3.msra.mxu0 %v308_v23  ;;  %573 = vmatpush3.msra.mxu1 %v193_v53 }
  0x59   :  { %585 = vmatprep.subr.mxu0 %v307_v25  ;;  %574 = vmatprep.subr.mxu1 %v192_v55 }
  0x5a   :  { %586 = vmatpush3.msra.mxu0 %v307_v25  ;;  %575 = vmatpush3.msra.mxu1 %v192_v55 }
  0x5b   :  { %587 = vmatprep.subr.mxu0 %v306_v27 }
  0x5c   :  { %588 = vmatpush3.msra.mxu0 %v306_v27 }
  0x5d   :  { %589 = vmatprep.subr.mxu0 %v305_v36 }
  0x5e   :  { %590 = vmatpush3.msra.mxu0 %v305_v36 }
  0x5f   :  { %591 = vmatprep.subr.mxu0 %v304_v38 }
  0x60   :  { %592 = vmatpush3.msra.mxu0 %v304_v38 }
  0x61   :  { %593 = vmatprep.subr.mxu0 %v303_v40 }
  0x62   :  { %594 = vmatpush3.msra.mxu0 %v303_v40 }
  0x63   :  { %595 = vmatprep.subr.mxu0 %v302_v42 }
  0x64   :  { %596 = vmatpush3.msra.mxu0 %v302_v42 }
  0x65   :  { %597 = vmatprep.subr.mxu0 %v301_v44 }
  0x66   :  { %598 = vmatpush3.msra.mxu0 %v301_v44 }
  0x67   :  { %599 = vmatprep.subr.mxu0 %v300_v46 }
  0x68   :  { %600 = vmatpush3.msra.mxu0 %v300_v46 }
  0x69   :  { %601 = vmatprep.subr.mxu0 %v299_v48 }
  0x6a   :  { %602 = vmatpush3.msra.mxu0 %v299_v48 }
  0x6b   :  { %603 = vmatprep.subr.mxu0 %v298_v50 }
  0x6c   :  { %604 = vmatpush3.msra.mxu0 %v298_v50 }
  0x6d   :  { %605 = vmatprep.subr.mxu0 %v297_v52 }
  0x6e   :  { %606 = vmatpush3.msra.mxu0 %v297_v52 }
  0x6f   :  { %607 = vmatprep.subr.mxu0 %v296_v54 }
  0x70   :  { %608 = vmatpush3.msra.mxu0 %v296_v54 }
  0x71   :  { %609 = vmatprep.subr.mxu0 %v295_v56 }
  0x72   :  { %610 = vmatpush3.msra.mxu0 %v295_v56 }
 0x113   :  { %v543_v29 = vpop.f32.mrf.mxu0 }
 0x114   :  { %v861_v30 = vadd.f32 %v543_v29, %v454_v28 }
 0x115   :  { %v171_v31 = vpop.f32.mrf.mxu0 }
 0x116   :  { %399 = vst [vmem:[#allocation10 + $0x8] sm:$0xff] %v861_v30  ;;  %v864_v32 = vadd.f32 %v454_v28, %v171_v31  ;;  %v181_v34 = vmul.f32 %v861_v30, %v861_v30 }
 0x118   :  { %398 = vst [vmem:[#allocation10] sm:$0xff] %v864_v32  ;;  %v180_v33 = vmul.f32 %v864_v32, %v864_v32 }
 0x11a   :  { %182 = vadd.xlane.f32.xlu0 %v180_v33 }
 0x11e   :  { %184 = vadd.xlane.f32.xlu0 %v181_v34 }
 0x1a3   :  { %v183_v57 = vpop.xlane.xlu0 %182 }
 0x1a4   :  { %v186_v58 = vmax.f32 %v183_v57, 1e-24 }
 0x1a6   :  { %623 = vrsqrt.f32 %v186_v58 }
 0x1a7   :  { %v185_v59 = vpop.xlane.xlu0 %184 }
 0x1a8   :  { %v187_v60 = vmax.f32 %v185_v59, 1e-24 }
 0x1aa   :  { %625 = vrsqrt.f32 %v187_v60 }
 0x1b3   :  { %v624_v61 = vpop.eup %623 }
 0x1b4   :  { %v190_v62 = vmul.f32 %v624_v61, %v864_v32 }
 0x1b6   :  { %576 = vmatprep.mubr.f32.mxu1 %v190_v62  ;;  %611 = vmatprep.mubr.f32.mxu0 %v190_v62 }
 0x1b7   :  { %v626_v63 = vpop.eup %625 }
 0x1b8   :  { %v191_v0 = vmul.f32 %v626_v63, %v861_v30 }
 0x1ba   :  { %577 = vmatmul.mubr.f32.vlgmr.msra.gmra.mxu1 %v191_v0  ;;  %612 = vmatmul.mubr.f32.vlgmr.msra.gmra.mxu0 %v191_v0 }
 0x27a   :  { %v578_v1 = vpop.f32.mrf.mxu1  ;;  %v613_v2 = vpop.f32.mrf.mxu0 }
 0x27b   :  { %v284_v3 = vmul.f32 %v578_v1, %v578_v1  ;;  %v387_v8 = vmul.f32 %v613_v2, %v613_v2 }
 0x27c   :  { %v274_v4 = vpop.f32.mrf.mxu1  ;;  %v377_v5 = vpop.f32.mrf.mxu0 }
 0x27d   :  { %v386_v6 = vmul.f32 %v377_v5, %v377_v5  ;;  %287 = vadd.xlane.f32.xlu1 %v284_v3  ;;  %v283_v7 = vmul.f32 %v274_v4, %v274_v4 }
 0x27f   :  { %388 = vadd.xlane.f32.xlu0 %v386_v6 }
 0x281   :  { %285 = vadd.xlane.f32.xlu1 %v283_v7 }
 0x285   :  { %390 = vadd.xlane.f32.xlu1 %v387_v8 }
 0x286   :  { %726 = shalt.err (!%p723_p10)
}
 0x287   :  { %415 = dma.vmem_to_hbm [thread:$0]  %s410_s21, 256, %s896_s5, [#allocation4], %s787_s29, %s787_s29, %s788_s30  }
 0x288   :  { %s792_s25 = smov [#allocation11]   ;;  %s793_s5 = smov [#allocation13]  }
 0x289   :  { %s421_s26 = sshll.u32 %s792_s25, 4  ;;  %s433_s27 = sshll.u32 %s793_s5, 4  ;;  %s422_s26 = int_to_ptr.vmem [resolvable:$true] %s421_s26  ;;  %s434_s27 = int_to_ptr.vmem [resolvable:$true] %s433_s27 }
 0x28a   :  { %s735_s28 = scalar_lea.vmem %s422_s26, 256  ;;  %p740_p12 = scmp.lt.s32.totalorder %s422_s26, %s422_s26 }
 0x28b   :  { %p736_p11 = scmp.ne.s32.totalorder %s422_s26, %s735_s28  ;;  %p741_p13 = scmp.lt.s32.totalorder %s735_s28, %s735_s28 }
 0x28d   :  { %p742_p0 = por %p741_p13, %p740_p12 }
 0x28f   :  { %p743_p1 = pnand %p742_p0, %p736_p11 }
 0x306   :  { %v288_v9 = vpop.xlane.xlu1 %287 }
 0x307   :  { %v290_v10 = vmax.f32 %v288_v9, 1e-24 }
 0x308   :  { %v389_v11 = vpop.xlane.xlu0 %388 }
 0x309   :  { %627 = vrsqrt.f32 %v290_v10  ;;  %v392_v12 = vmax.f32 %v389_v11, 1e-24 }
 0x30a   :  { %v286_v13 = vpop.xlane.xlu1 %285 }
 0x30b   :  { %629 = vrsqrt.f32 %v392_v12  ;;  %v289_v14 = vmax.f32 %v286_v13, 1e-24 }
 0x30d   :  { %631 = vrsqrt.f32 %v289_v14 }
 0x30e   :  { %v391_v15 = vpop.xlane.xlu1 %390 }
 0x30f   :  { %v393_v16 = vmax.f32 %v391_v15, 1e-24 }
 0x311   :  { %633 = vrsqrt.f32 %v393_v16 }
 0x316   :  { %v628_v17 = vpop.eup %627 }
 0x317   :  { %v294_v18 = vmul.f32 %v628_v17, %v578_v1 }
 0x318   :  { %v630_v19 = vpop.eup %629 }
 0x319   :  { %401 = vst [vmem:[#allocation11 + $0x8] sm:$0xff] %v294_v18  ;;  %v396_v20 = vmul.f32 %v630_v19, %v377_v5 }
 0x31a   :  { %v632_v21 = vpop.eup %631 }
 0x31b   :  { %v293_v22 = vmul.f32 %v632_v21, %v274_v4  ;;  %402 = vst [vmem:[#allocation13] sm:$0xff] %v396_v20 }
 0x31d   :  { %400 = vst [vmem:[#allocation11] sm:$0xff] %v293_v22 }
 0x31e   :  { %v634_v23 = vpop.eup %633 }
 0x31f   :  { %746 = shalt.err (!%p743_p1)
}
 0x320   :  { %427 = dma.vmem_to_hbm [thread:$0]  %s422_s26, 256, %s897_s6, [#allocation12], %s787_s29, %s787_s29, %s788_s30   ;;  %v397_v24 = vmul.f32 %v634_v23, %v613_v2 }
 0x321   :  { %s755_s10 = scalar_lea.vmem %s434_s27, 256  ;;  %p760_p3 = scmp.lt.s32.totalorder %s434_s27, %s434_s27 }
 0x322   :  { %403 = vst [vmem:[#allocation13 + $0x8] sm:$0xff] %v397_v24  ;;  %p756_p2 = scmp.ne.s32.totalorder %s434_s27, %s755_s10  ;;  %p761_p4 = scmp.lt.s32.totalorder %s755_s10, %s755_s10 }
 0x324   :  { %p762_p5 = por %p761_p4, %p760_p3 }
 0x326   :  { %p763_p6 = pnand %p762_p5, %p756_p2 }
 0x328   :  { %766 = shalt.err (!%p763_p6)
}
 0x329   :  { %439 = dma.vmem_to_hbm [thread:$0]  %s434_s27, 256, %s898_s7, [#allocation12], %s787_s29, %s787_s29, %s788_s30  }
 0x32a   :  { %781 = dma.done.wait [#allocation4], 256  }
 0x32b   :  { %782 = vsyncadd [#allocation4], 4294967040 }
 0x32c   :  { %783 = dma.done.wait [#allocation12], 512  }
 0x32d   :  { %784 = vsyncadd [#allocation12], 4294966784 }
 0x32e   :  { %449 = vsyncpa [#allocation3], 1 }
 0x32f   :  { %450 = vsyncpa [#allocation6], 1 }
 0x330   :  { %451 = vsyncpa [#allocation9], 1 }
 0x331   :  { %452 = vsyncpa [#allocation4], 1 }
 0x332   :  { %453 = vsyncpa [#allocation12], 1 }

</bundles_post_ra>
